<compile_context>
chip_gen: v7x
topology: tpu7x:2x2x1
jax: 0.10.0
libtpu: 0.0.40
codegen_flags: <defaults>
</compile_context>

<pallas_src>
import functools
import math

import numpy as np

import jax
import jax.numpy as jnp
from jax.experimental import pallas as pl
from jax.experimental.pallas import tpu as pltpu


def _ffn_kernel(x_ref, w1_ref, b1_ref, w2_ref, b2_ref, o_ref):
    # x_ref : (nb, C_in,  TM)   channels on sublanes, TM voxels on lanes
    # w1_ref: (C_mid, C_in)     conv1 weight (PyTorch [out, in] layout)
    # b1_ref: (C_mid, 1)
    # w2_ref: (C_out, C_mid)    conv2 weight
    # b2_ref: (C_out, 1)
    # o_ref : (nb, C_out, TM)   lane-dense output block
    nb, c_in, _ = x_ref.shape
    c_mid = w1_ref.shape[0]
    c_out = w2_ref.shape[0]

    w1 = w1_ref[...]
    b1 = b1_ref[...]
    w2 = w2_ref[...]
    b2 = b2_ref[...]

    if max(c_in, c_mid, c_out) <= 32:
        # Tiny channel counts: unrolled VPU broadcast-FMA over the lane slab.
        # (An MXU matmul would use <1% of the systolic array here and only pay
        #  push/pop latency.)  (c_mid, 1) * (nb, 1, TM) -> (nb, c_mid, TM).
        x = x_ref[...]
        h = w1[:, 0:1] * x[:, 0:1, :]
        for i in range(1, c_in):
            h = h + w1[:, i:i + 1] * x[:, i:i + 1, :]
        h = jnp.maximum(h + b1, 0.0)

        y = w2[:, 0:1] * h[:, 0:1, :]
        for j in range(1, c_mid):
            y = y + w2[:, j:j + 1] * h[:, j:j + 1, :]
        o_ref[...] = (y + b2).astype(o_ref.dtype)
    else:
        # Real channel widths: MXU path, one (C, TM) slab per batch element in
        # the block.  bf16 inputs stay bf16 (MXU-native); f32 stays f32.
        for n in range(nb):
            xn = x_ref[n]                                     # (C_in, TM)
            h = jnp.dot(w1, xn, preferred_element_type=jnp.float32) + b1
            h = jnp.maximum(h, 0.0)
            y = jnp.dot(w2, h.astype(w2.dtype),
                        preferred_element_type=jnp.float32) + b2
            o_ref[n] = y.astype(o_ref.dtype)


def _vmem_capacity_bytes():
    try:
        return int(pltpu.get_tpu_info().vmem_capacity_bytes)
    except Exception:
        return 64 << 20          # be conservative (v7x per-TC VMEM)


def _choose_tiling(N, S, c_in, c_mid, c_out, dsize, weight_bytes,
                   target_step_bytes):
    """Pick (nb, tm, vmem_limit) from a per-step HBM byte target + VMEM budget."""
    vmem_cap = _vmem_capacity_bytes()

    hbm_per_elem = (c_in + c_out) * dsize            # x + y HBM bytes per voxel
    # VMEM per voxel of a block: double-buffered x & y tiles + f32 h/y temps.
    vmem_per_elem = 2 * hbm_per_elem + (c_mid + c_out) * 4
    resident_w = 2 * weight_bytes                    # pipeline double-buffers

    budget = int(0.6 * vmem_cap)                     # headroom for scratch etc.
    elems_budget = max(128, (budget - resident_w) // vmem_per_elem)
    elems_target = max(128, target_step_bytes // hbm_per_elem)
    elems = int(min(elems_target, elems_budget, 1 << 16))

    if S >= elems:
        nb = 1
        tm = max(128, (elems // 128) * 128)
        if S % 128 == 0 and S % tm != 0:
            # Prefer a 128-multiple divisor of S near the target so the last
            # spatial block is not ragged (no masked tail at all).
            for cand in range(tm, tm // 2, -128):
                if S % cand == 0:
                    tm = cand
                    break
    else:
        # Small spatial extent: take it whole (block dim == full array dim,
        # always legal) and pack several batch elements per grid step.
        tm = S
        want = max(1, min(N, elems // max(S, 1)))
        nb = max(d for d in range(1, want + 1) if N % d == 0)

    blk_in = nb * c_in * tm * dsize
    blk_out = nb * c_out * tm * dsize
    temps = nb * (c_mid + c_out) * tm * 4            # f32 intermediates
    vmem_need = resident_w + 2 * (blk_in + blk_out) + temps
    vmem_limit = int(min(max(vmem_need + (4 << 20), 16 << 20),
                         int(0.8 * vmem_cap)))
    return nb, tm, vmem_limit


@functools.partial(jax.jit, static_argnames=("nb", "tm", "vmem_limit"))
def _ffn_impl(x, w1, b1, w2, b2, *, nb, tm, vmem_limit):
    # Normalise Conv3d parameter layouts ([out, in, 1, 1, 1] -> [out, in]).
    if w1.ndim > 2:
        w1 = w1.reshape(w1.shape[0], w1.shape[1])
    if w2.ndim > 2:
        w2 = w2.reshape(w2.shape[0], w2.shape[1])
    b1 = b1.reshape(-1, 1)
    b2 = b2.reshape(-1, 1)

    lead = x.shape[:-4]                  # (N,) for 5-D, (B, Seq) for 6-D input
    c_in = x.shape[-4]
    spatial = x.shape[-3:]
    N = math.prod(lead)
    S = math.prod(spatial)
    c_mid, c_out = w1.shape[0], w2.shape[0]

    x3 = x.reshape(N, c_in, S)           # free: trailing dims are contiguous

    dsize = jnp.dtype(x.dtype).itemsize
    wbytes = ((w1.size + b1.size + w2.size + b2.size)
              * jnp.dtype(w1.dtype).itemsize)
    cost = pl.CostEstimate(
        flops=2 * N * S * (c_in * c_mid + c_mid * c_out),
        transcendentals=0,
        bytes_accessed=N * S * (c_in + c_out) * dsize + wbytes,
    )

    out3 = pl.pallas_call(
        _ffn_kernel,
        out_shape=jax.ShapeDtypeStruct((N, c_out, S), x.dtype),
        grid_spec=pltpu.PrefetchScalarGridSpec(
            num_scalar_prefetch=0,
            grid=(pl.cdiv(N, nb), pl.cdiv(S, tm)),
            in_specs=[
                pl.BlockSpec((nb, c_in, tm), lambda n, s: (n, 0, s)),
                pl.BlockSpec((c_mid, c_in), lambda n, s: (0, 0)),
                pl.BlockSpec((c_mid, 1), lambda n, s: (0, 0)),
                pl.BlockSpec((c_out, c_mid), lambda n, s: (0, 0)),
                pl.BlockSpec((c_out, 1), lambda n, s: (0, 0)),
            ],
            out_specs=pl.BlockSpec((nb, c_out, tm), lambda n, s: (n, 0, s)),
        ),
        compiler_params=pltpu.CompilerParams(
            dimension_semantics=("parallel", "parallel"),
            vmem_limit_bytes=vmem_limit,
        ),
        cost_estimate=cost,
    )(x3, w1, b1, w2, b2)

    return out3.reshape(lead + (c_out,) + spatial)


def ffn_forward(x, w1, b1, w2, b2, *, target_step_bytes=4 << 20):
    """Forward pass matching the PyTorch FFN module.

    x : [N, C_in, D, H, W]  or  [B, Seq, C_in, D, H, W]   (NCDHW convention)
    w1: [C_mid, C_in]  (or [C_mid, C_in, 1, 1, 1])  conv1 weight
    b1: [C_mid]
    w2: [C_out, C_mid] (or [C_out, C_mid, 1, 1, 1]) conv2 weight
    b2: [C_out]
    """
    if x.ndim not in (5, 6):
        raise ValueError(f"expected a 5-D or 6-D input, got shape {x.shape}")
    lead = x.shape[:-4]
    N = math.prod(lead)
    c_in = x.shape[-4]
    S = math.prod(x.shape[-3:])
    c_mid = w1.shape[0]
    c_out = w2.shape[0]
    dsize = jnp.dtype(x.dtype).itemsize
    wbytes = int((math.prod(w1.shape) + math.prod(w2.shape) + c_mid + c_out)
                 * jnp.dtype(w1.dtype).itemsize)

    nb, tm, vmem_limit = _choose_tiling(N, S, c_in, c_mid, c_out, dsize,
                                        wbytes, target_step_bytes)
    return _ffn_impl(x, w1, b1, w2, b2, nb=nb, tm=tm, vmem_limit=vmem_limit)


if __name__ == "__main__":
    key = jax.random.PRNGKey(0)
    keys = jax.random.split(key, 10)

    def reference(x5, w1, b1, w2, b2):
        # float64 numpy reference of the per-voxel channel MLP.
        xr = np.asarray(x5, np.float64)
        w1r, b1r = np.asarray(w1, np.float64), np.asarray(b1, np.float64)
        w2r, b2r = np.asarray(w2, np.float64), np.asarray(b2, np.float64)
        n, c = xr.shape[:2]
        x3 = xr.reshape(n, c, -1)
        h = np.maximum(np.einsum("mc,ncs->nms", w1r, x3) + b1r[:, None], 0.0)
        y = np.einsum("om,nms->nos", w2r, h) + b2r[:, None]
        return y.reshape((n, w2r.shape[0]) + xr.shape[2:])

    def check(got, want, tag, atol=1e-4, rtol=1e-4):
        got = np.asarray(got)
        assert got.shape == want.shape, (tag, got.shape, want.shape)
        err = float(np.max(np.abs(got - want)))
        assert np.allclose(got, want, atol=atol, rtol=rtol), (tag, err)

    # --- 1) small 5-D NCDHW input, tiny channels (VPU path, nb > 1 packing) --
    B, C_in, C_out, D, H, W = 2, 4, 8, 8, 8, 8
    x = jax.random.normal(keys[0], (B, C_in, D, H, W), dtype=jnp.float32)
    w1 = jax.random.normal(keys[1], (C_out, C_in), dtype=jnp.float32) * 0.1
    b1 = jax.random.normal(keys[2], (C_out,), dtype=jnp.float32) * 0.1
    w2 = jax.random.normal(keys[3], (C_out, C_out), dtype=jnp.float32) * 0.1
    b2 = jax.random.normal(keys[4], (C_out,), dtype=jnp.float32) * 0.1
    y = jax.block_until_ready(ffn_forward(x, w1, b1, w2, b2))
    check(y, reference(x, w1, b1, w2, b2), "5d-tiny")

    # --- 2) 6-D (B, Seq, C, D, H, W) path of the module (small spatial) ------
    x6 = jax.random.normal(keys[5], (2, 3, C_in, 4, 4, 4), dtype=jnp.float32)
    y6 = jax.block_until_ready(ffn_forward(x6, w1, b1, w2, b2))
    ref6 = reference(np.asarray(x6).reshape(6, C_in, 4, 4, 4), w1, b1, w2, b2)
    check(y6, ref6.reshape(2, 3, C_out, 4, 4, 4), "6d")

    # --- 3) ragged spatial extent (S = 729, TM = 128 -> masked tail block) ---
    xr = jax.random.normal(keys[6], (2, C_in, 9, 9, 9), dtype=jnp.float32)
    yr = jax.block_until_ready(
        ffn_forward(xr, w1, b1, w2, b2, target_step_bytes=8 << 10))
    check(yr, reference(xr, w1, b1, w2, b2), "ragged")

    # --- 4) wider channels (MXU path); looser tol for MXU f32 pass rounding --
    Ci, Co = 48, 64
    xm = jax.random.normal(keys[7], (2, Ci, 4, 4, 8), dtype=jnp.float32)
    w1m = jax.random.normal(keys[8], (Co, Ci), dtype=jnp.float32) * 0.05
    b1m = jnp.full((Co,), 0.01, jnp.float32)
    w2m = jax.random.normal(keys[9], (Co, Co), dtype=jnp.float32) * 0.05
    b2m = jnp.full((Co,), -0.01, jnp.float32)
    ym = jax.block_until_ready(ffn_forward(xm, w1m, b1m, w2m, b2m))
    check(ym, reference(xm, w1m, b1m, w2m, b2m), "mxu", atol=2e-2, rtol=2e-2)

    print("KERNEL_OK")
</pallas_src>

<mosaic_0001>
module attributes {stable_mosaic.version = 11 : i64} {
  func.func @_ffn_kernel(%arg0: i32, %arg1: i32, %arg2: memref<2x4x512xf32, #tpu.memory_space<vmem>>, %arg3: memref<8x4xf32, #tpu.memory_space<vmem>>, %arg4: memref<8x1xf32, #tpu.memory_space<vmem>>, %arg5: memref<8x8xf32, #tpu.memory_space<vmem>>, %arg6: memref<8x1xf32, #tpu.memory_space<vmem>>, %arg7: memref<2x8x512xf32, #tpu.memory_space<vmem>>) attributes {dimension_semantics = [#tpu.dimension_semantics<parallel>, #tpu.dimension_semantics<parallel>], iteration_bounds = array<i64: 1, 1>, scalar_prefetch = 0 : i64, scratch_operands = 0 : i64, tpu.core_type = #tpu.core_type<tc>, window_params = [{transform_indices = @transform_0, window_bounds = array<i64: 2, 4, 512>}, {pipeline_mode = #tpu.pipeline_mode<synchronous>, transform_indices = @transform_1, window_bounds = array<i64: 8, 4>}, {pipeline_mode = #tpu.pipeline_mode<synchronous>, transform_indices = @transform_2, window_bounds = array<i64: 8, 1>}, {pipeline_mode = #tpu.pipeline_mode<synchronous>, transform_indices = @transform_3, window_bounds = array<i64: 8, 8>}, {pipeline_mode = #tpu.pipeline_mode<synchronous>, transform_indices = @transform_4, window_bounds = array<i64: 8, 1>}, {transform_indices = @transform_5, window_bounds = array<i64: 2, 8, 512>}]} {
    %c0 = arith.constant 0 : index
    %c0_0 = arith.constant 0 : index
    %0 = vector.load %arg3[%c0, %c0_0] : memref<8x4xf32, #tpu.memory_space<vmem>>, vector<8x4xf32>
    %c0_1 = arith.constant 0 : index
    %c0_2 = arith.constant 0 : index
    %1 = vector.load %arg4[%c0_1, %c0_2] : memref<8x1xf32, #tpu.memory_space<vmem>>, vector<8x1xf32>
    %c0_3 = arith.constant 0 : index
    %c0_4 = arith.constant 0 : index
    %2 = vector.load %arg5[%c0_3, %c0_4] : memref<8x8xf32, #tpu.memory_space<vmem>>, vector<8x8xf32>
    %c0_5 = arith.constant 0 : index
    %c0_6 = arith.constant 0 : index
    %3 = vector.load %arg6[%c0_5, %c0_6] : memref<8x1xf32, #tpu.memory_space<vmem>>, vector<8x1xf32>
    %c0_7 = arith.constant 0 : index
    %c0_8 = arith.constant 0 : index
    %c0_9 = arith.constant 0 : index
    %4 = vector.load %arg2[%c0_7, %c0_8, %c0_9] : memref<2x4x512xf32, #tpu.memory_space<vmem>>, vector<2x4x512xf32>
    %5 = vector.extract_strided_slice %0 {offsets = [0, 0], sizes = [8, 1], strides = [1, 1]} : vector<8x4xf32> to vector<8x1xf32>
    %6 = vector.extract_strided_slice %4 {offsets = [0, 0, 0], sizes = [2, 1, 512], strides = [1, 1, 1]} : vector<2x4x512xf32> to vector<2x1x512xf32>
    %7 = vector.shape_cast %5 : vector<8x1xf32> to vector<1x8x1xf32>
    %8 = vector.broadcast %7 : vector<1x8x1xf32> to vector<2x8x512xf32>
    %9 = vector.broadcast %6 : vector<2x1x512xf32> to vector<2x8x512xf32>
    %10 = arith.mulf %8, %9 : vector<2x8x512xf32>
    %11 = vector.extract_strided_slice %0 {offsets = [0, 1], sizes = [8, 1], strides = [1, 1]} : vector<8x4xf32> to vector<8x1xf32>
    %12 = vector.extract_strided_slice %4 {offsets = [0, 1, 0], sizes = [2, 1, 512], strides = [1, 1, 1]} : vector<2x4x512xf32> to vector<2x1x512xf32>
    %13 = vector.shape_cast %11 : vector<8x1xf32> to vector<1x8x1xf32>
    %14 = vector.broadcast %13 : vector<1x8x1xf32> to vector<2x8x512xf32>
    %15 = vector.broadcast %12 : vector<2x1x512xf32> to vector<2x8x512xf32>
    %16 = arith.mulf %14, %15 : vector<2x8x512xf32>
    %17 = arith.addf %10, %16 : vector<2x8x512xf32>
    %18 = vector.extract_strided_slice %0 {offsets = [0, 2], sizes = [8, 1], strides = [1, 1]} : vector<8x4xf32> to vector<8x1xf32>
    %19 = vector.extract_strided_slice %4 {offsets = [0, 2, 0], sizes = [2, 1, 512], strides = [1, 1, 1]} : vector<2x4x512xf32> to vector<2x1x512xf32>
    %20 = vector.shape_cast %18 : vector<8x1xf32> to vector<1x8x1xf32>
    %21 = vector.broadcast %20 : vector<1x8x1xf32> to vector<2x8x512xf32>
    %22 = vector.broadcast %19 : vector<2x1x512xf32> to vector<2x8x512xf32>
    %23 = arith.mulf %21, %22 : vector<2x8x512xf32>
    %24 = arith.addf %17, %23 : vector<2x8x512xf32>
    %25 = vector.extract_strided_slice %0 {offsets = [0, 3], sizes = [8, 1], strides = [1, 1]} : vector<8x4xf32> to vector<8x1xf32>
    %26 = vector.extract_strided_slice %4 {offsets = [0, 3, 0], sizes = [2, 1, 512], strides = [1, 1, 1]} : vector<2x4x512xf32> to vector<2x1x512xf32>
    %27 = vector.shape_cast %25 : vector<8x1xf32> to vector<1x8x1xf32>
    %28 = vector.broadcast %27 : vector<1x8x1xf32> to vector<2x8x512xf32>
    %29 = vector.broadcast %26 : vector<2x1x512xf32> to vector<2x8x512xf32>
    %30 = arith.mulf %28, %29 : vector<2x8x512xf32>
    %31 = arith.addf %24, %30 : vector<2x8x512xf32>
    %32 = vector.shape_cast %1 : vector<8x1xf32> to vector<1x8x1xf32>
    %33 = vector.broadcast %32 : vector<1x8x1xf32> to vector<2x8x512xf32>
    %34 = arith.addf %31, %33 : vector<2x8x512xf32>
    %cst = arith.constant 0.000000e+00 : f32
    %35 = vector.broadcast %cst : f32 to vector<2x8x512xf32>
    %36 = arith.maximumf %34, %35 : vector<2x8x512xf32>
    %37 = vector.extract_strided_slice %2 {offsets = [0, 0], sizes = [8, 1], strides = [1, 1]} : vector<8x8xf32> to vector<8x1xf32>
    %38 = vector.extract_strided_slice %36 {offsets = [0, 0, 0], sizes = [2, 1, 512], strides = [1, 1, 1]} : vector<2x8x512xf32> to vector<2x1x512xf32>
    %39 = vector.shape_cast %37 : vector<8x1xf32> to vector<1x8x1xf32>
    %40 = vector.broadcast %39 : vector<1x8x1xf32> to vector<2x8x512xf32>
    %41 = vector.broadcast %38 : vector<2x1x512xf32> to vector<2x8x512xf32>
    %42 = arith.mulf %40, %41 : vector<2x8x512xf32>
    %43 = vector.extract_strided_slice %2 {offsets = [0, 1], sizes = [8, 1], strides = [1, 1]} : vector<8x8xf32> to vector<8x1xf32>
    %44 = vector.extract_strided_slice %36 {offsets = [0, 1, 0], sizes = [2, 1, 512], strides = [1, 1, 1]} : vector<2x8x512xf32> to vector<2x1x512xf32>
    %45 = vector.shape_cast %43 : vector<8x1xf32> to vector<1x8x1xf32>
    %46 = vector.broadcast %45 : vector<1x8x1xf32> to vector<2x8x512xf32>
    %47 = vector.broadcast %44 : vector<2x1x512xf32> to vector<2x8x512xf32>
    %48 = arith.mulf %46, %47 : vector<2x8x512xf32>
    %49 = arith.addf %42, %48 : vector<2x8x512xf32>
    %50 = vector.extract_strided_slice %2 {offsets = [0, 2], sizes = [8, 1], strides = [1, 1]} : vector<8x8xf32> to vector<8x1xf32>
    %51 = vector.extract_strided_slice %36 {offsets = [0, 2, 0], sizes = [2, 1, 512], strides = [1, 1, 1]} : vector<2x8x512xf32> to vector<2x1x512xf32>
    %52 = vector.shape_cast %50 : vector<8x1xf32> to vector<1x8x1xf32>
    %53 = vector.broadcast %52 : vector<1x8x1xf32> to vector<2x8x512xf32>
    %54 = vector.broadcast %51 : vector<2x1x512xf32> to vector<2x8x512xf32>
    %55 = arith.mulf %53, %54 : vector<2x8x512xf32>
    %56 = arith.addf %49, %55 : vector<2x8x512xf32>
    %57 = vector.extract_strided_slice %2 {offsets = [0, 3], sizes = [8, 1], strides = [1, 1]} : vector<8x8xf32> to vector<8x1xf32>
    %58 = vector.extract_strided_slice %36 {offsets = [0, 3, 0], sizes = [2, 1, 512], strides = [1, 1, 1]} : vector<2x8x512xf32> to vector<2x1x512xf32>
    %59 = vector.shape_cast %57 : vector<8x1xf32> to vector<1x8x1xf32>
    %60 = vector.broadcast %59 : vector<1x8x1xf32> to vector<2x8x512xf32>
    %61 = vector.broadcast %58 : vector<2x1x512xf32> to vector<2x8x512xf32>
    %62 = arith.mulf %60, %61 : vector<2x8x512xf32>
    %63 = arith.addf %56, %62 : vector<2x8x512xf32>
    %64 = vector.extract_strided_slice %2 {offsets = [0, 4], sizes = [8, 1], strides = [1, 1]} : vector<8x8xf32> to vector<8x1xf32>
    %65 = vector.extract_strided_slice %36 {offsets = [0, 4, 0], sizes = [2, 1, 512], strides = [1, 1, 1]} : vector<2x8x512xf32> to vector<2x1x512xf32>
    %66 = vector.shape_cast %64 : vector<8x1xf32> to vector<1x8x1xf32>
    %67 = vector.broadcast %66 : vector<1x8x1xf32> to vector<2x8x512xf32>
    %68 = vector.broadcast %65 : vector<2x1x512xf32> to vector<2x8x512xf32>
    %69 = arith.mulf %67, %68 : vector<2x8x512xf32>
    %70 = arith.addf %63, %69 : vector<2x8x512xf32>
    %71 = vector.extract_strided_slice %2 {offsets = [0, 5], sizes = [8, 1], strides = [1, 1]} : vector<8x8xf32> to vector<8x1xf32>
    %72 = vector.extract_strided_slice %36 {offsets = [0, 5, 0], sizes = [2, 1, 512], strides = [1, 1, 1]} : vector<2x8x512xf32> to vector<2x1x512xf32>
    %73 = vector.shape_cast %71 : vector<8x1xf32> to vector<1x8x1xf32>
    %74 = vector.broadcast %73 : vector<1x8x1xf32> to vector<2x8x512xf32>
    %75 = vector.broadcast %72 : vector<2x1x512xf32> to vector<2x8x512xf32>
    %76 = arith.mulf %74, %75 : vector<2x8x512xf32>
    %77 = arith.addf %70, %76 : vector<2x8x512xf32>
    %78 = vector.extract_strided_slice %2 {offsets = [0, 6], sizes = [8, 1], strides = [1, 1]} : vector<8x8xf32> to vector<8x1xf32>
    %79 = vector.extract_strided_slice %36 {offsets = [0, 6, 0], sizes = [2, 1, 512], strides = [1, 1, 1]} : vector<2x8x512xf32> to vector<2x1x512xf32>
    %80 = vector.shape_cast %78 : vector<8x1xf32> to vector<1x8x1xf32>
    %81 = vector.broadcast %80 : vector<1x8x1xf32> to vector<2x8x512xf32>
    %82 = vector.broadcast %79 : vector<2x1x512xf32> to vector<2x8x512xf32>
    %83 = arith.mulf %81, %82 : vector<2x8x512xf32>
    %84 = arith.addf %77, %83 : vector<2x8x512xf32>
    %85 = vector.extract_strided_slice %2 {offsets = [0, 7], sizes = [8, 1], strides = [1, 1]} : vector<8x8xf32> to vector<8x1xf32>
    %86 = vector.extract_strided_slice %36 {offsets = [0, 7, 0], sizes = [2, 1, 512], strides = [1, 1, 1]} : vector<2x8x512xf32> to vector<2x1x512xf32>
    %87 = vector.shape_cast %85 : vector<8x1xf32> to vector<1x8x1xf32>
    %88 = vector.broadcast %87 : vector<1x8x1xf32> to vector<2x8x512xf32>
    %89 = vector.broadcast %86 : vector<2x1x512xf32> to vector<2x8x512xf32>
    %90 = arith.mulf %88, %89 : vector<2x8x512xf32>
    %91 = arith.addf %84, %90 : vector<2x8x512xf32>
    %92 = vector.shape_cast %3 : vector<8x1xf32> to vector<1x8x1xf32>
    %93 = vector.broadcast %92 : vector<1x8x1xf32> to vector<2x8x512xf32>
    %94 = arith.addf %91, %93 : vector<2x8x512xf32>
    %c0_10 = arith.constant 0 : index
    %c0_11 = arith.constant 0 : index
    %c0_12 = arith.constant 0 : index
    %95 = vector.load %arg7[%c0_10, %c0_11, %c0_12] : memref<2x8x512xf32, #tpu.memory_space<vmem>>, vector<2x8x512xf32>
    tpu.vector_store %arg7[%c0_10, %c0_11, %c0_12], %94 {strides = array<i32>} : memref<2x8x512xf32, #tpu.memory_space<vmem>>, vector<2x8x512xf32>,
    return
  }
  func.func @transform_0(%arg0: i32, %arg1: i32) -> (i32, i32, i32) {
    %c0_i32 = arith.constant 0 : i32
    %c0_i32_0 = arith.constant 0 : i32
    return %arg0, %c0_i32, %arg1 : i32, i32, i32
  }
  func.func @transform_1(%arg0: i32, %arg1: i32) -> (i32, i32) {
    %c0_i32 = arith.constant 0 : i32
    %c0_i32_0 = arith.constant 0 : i32
    %c0_i32_1 = arith.constant 0 : i32
    return %c0_i32, %c0_i32_0 : i32, i32
  }
  func.func @transform_2(%arg0: i32, %arg1: i32) -> (i32, i32) {
    %c0_i32 = arith.constant 0 : i32
    %c0_i32_0 = arith.constant 0 : i32
    %c0_i32_1 = arith.constant 0 : i32
    return %c0_i32, %c0_i32_0 : i32, i32
  }
  func.func @transform_3(%arg0: i32, %arg1: i32) -> (i32, i32) {
    %c0_i32 = arith.constant 0 : i32
    %c0_i32_0 = arith.constant 0 : i32
    %c0_i32_1 = arith.constant 0 : i32
    return %c0_i32, %c0_i32_0 : i32, i32
  }
  func.func @transform_4(%arg0: i32, %arg1: i32) -> (i32, i32) {
    %c0_i32 = arith.constant 0 : i32
    %c0_i32_0 = arith.constant 0 : i32
    %c0_i32_1 = arith.constant 0 : i32
    return %c0_i32, %c0_i32_0 : i32, i32
  }
  func.func @transform_5(%arg0: i32, %arg1: i32) -> (i32, i32, i32) {
    %c0_i32 = arith.constant 0 : i32
    %c0_i32_0 = arith.constant 0 : i32
    return %arg0, %c0_i32, %arg1 : i32, i32, i32
  }
}

</mosaic_0001>

<bundles_post_ra>
// kernel: _ffn_impl.1
= control target key start
LH: loop header
LB: loop body
LE: loop exit
PB: predicated region body
PF: predicated region fallthrough
CT: control target
= control target key end

     0   :  { %v871_v0 = vmov 2   ;;  %v872_v1 = vmov 0   ;;  %v873_v3 = vmov 3   ;;  %v874_v4 = vmov 1   ;;  %s1245_s1 = inlined_call_operand.vmem [shape: f32[8,4], index: 1, kind: input, shape index: {}]   ;;  %s1246_s2 = inlined_call_operand.vmem [shape: f32[8,1], index: 2, kind: input, shape index: {}]   ;;  %s1247_s3 = inlined_call_operand.vmem [shape: f32[8,8], index: 3, kind: input, shape index: {}]   ;;  %s1248_s4 = inlined_call_operand.vmem [shape: f32[8,1], index: 4, kind: input, shape index: {}]   ;;  %s1249_s0 = inlined_call_operand.vmem [shape: f32[2,4,512], index: 0, kind: input, shape index: {}]   ;;  %s1250_s5 = inlined_call_operand.vmem [shape: f32[2,8,512], index: 5, kind: output, shape index: {}]  }
   0x1   :  { %858 = vset.pattern.permute.xlu1 %v871_v0  ;;  %856 = vset.pattern.permute.xlu0 %v872_v1  ;;  %v20_v2 = vld [vmem:[%s1245_s1] sm:$0xff]  ;;  %v875_v7 = vmov 6   ;;  %v876_v8 = vmov 4   ;;  %v877_v9 = vmov 5   ;;  %v878_v10 = vmov 7   ;;  %v933_v17 = vld [vmem:[%s1249_s0 + $0x8] sm:$0xff] }
   0x2   :  { %210 = vperm.xlu1 %858, %v20_v2   ;;  %30 = vperm.xlu0 %856, %v20_v2   ;;  %v21_v5 = vld [vmem:[%s1246_s2] sm:$0xff]  ;;  %v37_v12 = vlaneseq  ;;  %v938_v18 = vld [vmem:[%s1249_s0 + $0x10] sm:$0xff]  ;;  %v943_v19 = vld [vmem:[%s1249_s0 + $0x18] sm:$0xff] }
   0x3   :  { %v22_v6 = vld [vmem:[%s1247_s3] sm:$0xff] }
   0x4   :  { %v23_v11 = vld [vmem:[%s1248_s4] sm:$0xff]  ;;  %v38_v13 = vshrl.u32 %v37_v12, 7 }
   0x5   :  { %v928_v16 = vld [vmem:[%s1249_s0] sm:$0xff] }
   0x6   :  { %859 = vset.pattern.permute.xlu1 %v873_v3  ;;  %857 = vset.pattern.permute.xlu0 %v874_v4  ;;  %v921_v14 = vsub.s32 2, %v38_v13  ;;  %v923_v15 = vsub.s32 6, %v38_v13  ;;  %v945_v20 = vsub.s32 0, %v38_v13  ;;  %v947_v21 = vsub.s32 4, %v38_v13 }
   0x7   :  { %302 = vperm.xlu1 %859, %v20_v2   ;;  %118 = vperm.xlu0 %857, %v20_v2   ;;  %v949_v22 = vsub.s32 3, %v38_v13  ;;  %v951_v23 = vsub.s32 7, %v38_v13  ;;  %v953_v24 = vsub.s32 1, %v38_v13  ;;  %v955_v25 = vsub.s32 5, %v38_v13 }
   0x8   :  { %v216_v26 = vrot.slane %v928_v16, %v921_v14  ;;  %v220_v27 = vrot.slane %v928_v16, %v923_v15  ;;  %v224_v28 = vrot.slane %v933_v17, %v921_v14  ;;  %v228_v29 = vrot.slane %v933_v17, %v923_v15 }
   0x9   :  { %v232_v30 = vrot.slane %v938_v18, %v921_v14  ;;  %v236_v31 = vrot.slane %v938_v18, %v923_v15  ;;  %v240_v32 = vrot.slane %v943_v19, %v921_v14  ;;  %v244_v33 = vrot.slane %v943_v19, %v923_v15 }
   0xa   :  { %v40_v34 = vrot.slane %v928_v16, %v945_v20  ;;  %v44_v35 = vrot.slane %v928_v16, %v947_v21  ;;  %v48_v36 = vrot.slane %v933_v17, %v945_v20  ;;  %v52_v37 = vrot.slane %v933_v17, %v947_v21 }
   0xb   :  { %860 = vset.pattern.permute.xlu1 %v872_v1  ;;  %861 = vset.pattern.permute.xlu0 %v872_v1  ;;  %v56_v38 = vrot.slane %v938_v18, %v945_v20  ;;  %v60_v39 = vrot.slane %v938_v18, %v947_v21  ;;  %v64_v40 = vrot.slane %v943_v19, %v945_v20 }
   0xc   :  { %395 = vperm.xlu1 %860, %v21_v5   ;;  %416 = vperm.xlu0 %861, %v22_v6   ;;  %v68_v41 = vrot.slane %v943_v19, %v947_v21  ;;  %v256_v42 = vrot.slane %v216_v26, %v921_v14  ;;  %v260_v43 = vrot.slane %v220_v27, %v921_v14 }
   0xd   :  { %v264_v44 = vrot.slane %v224_v28, %v921_v14  ;;  %v268_v45 = vrot.slane %v228_v29, %v921_v14  ;;  %v272_v46 = vrot.slane %v232_v30, %v921_v14  ;;  %v276_v47 = vrot.slane %v236_v31, %v921_v14 }
   0xe   :  { %v280_v48 = vrot.slane %v240_v32, %v921_v14  ;;  %v284_v49 = vrot.slane %v244_v33, %v921_v14  ;;  %v80_v50 = vrot.slane %v40_v34, %v945_v20  ;;  %v84_v51 = vrot.slane %v44_v35, %v945_v20 }
   0xf   :  { %v88_v52 = vrot.slane %v48_v36, %v945_v20  ;;  %v92_v53 = vrot.slane %v52_v37, %v945_v20  ;;  %v96_v54 = vrot.slane %v56_v38, %v945_v20  ;;  %v100_v55 = vrot.slane %v60_v39, %v945_v20 }
  0x10   :  { %862 = vset.pattern.permute.xlu1 %v874_v4  ;;  %864 = vset.pattern.permute.xlu0 %v873_v3  ;;  %v104_v56 = vrot.slane %v64_v40, %v945_v20  ;;  %v108_v57 = vrot.slane %v68_v41, %v945_v20  ;;  %v308_v58 = vrot.slane %v928_v16, %v949_v22 }
  0x11   :  { %460 = vperm.xlu1 %862, %v22_v6   ;;  %564 = vperm.xlu0 %864, %v22_v6   ;;  %v312_v59 = vrot.slane %v928_v16, %v951_v23  ;;  %v316_v60 = vrot.slane %v933_v17, %v949_v22  ;;  %v320_v61 = vrot.slane %v933_v17, %v951_v23 }
  0x12   :  { %v324_v62 = vrot.slane %v938_v18, %v949_v22  ;;  %v328_v63 = vrot.slane %v938_v18, %v951_v23  ;;  %v124_v2 = vrot.slane %v928_v16, %v953_v24  ;;  %v128_v3 = vrot.slane %v928_v16, %v955_v25 }
  0x13   :  { %v132_v4 = vrot.slane %v933_v17, %v953_v24  ;;  %v136_v5 = vrot.slane %v933_v17, %v955_v25  ;;  %v356_v12 = vrot.slane %v316_v60, %v949_v22  ;;  %v360_v13 = vrot.slane %v320_v61, %v949_v22 }
  0x14   :  { %v364_v16 = vrot.slane %v324_v62, %v949_v22  ;;  %v368_v17 = vrot.slane %v328_v63, %v949_v22  ;;  %v168_v29 = vrot.slane %v128_v3, %v953_v24 }
  0x15   :  { %863 = vset.pattern.permute.xlu1 %v871_v0  ;;  %867 = vset.pattern.permute.xlu0 %v875_v7  ;;  %v332_v0 = vrot.slane %v943_v19, %v949_v22  ;;  %v144_v7 = vrot.slane %v938_v18, %v955_v25  ;;  %v172_v30 = vrot.slane %v132_v4, %v953_v24 }
  0x16   :  { %512 = vperm.xlu1 %863, %v22_v6   ;;  %720 = vperm.xlu0 %867, %v22_v6   ;;  %v176_v31 = vrot.slane %v136_v5, %v953_v24 }
  0x17   :  { %v184_v33 = vrot.slane %v144_v7, %v953_v24 }
  0x1a   :  { %865 = vset.pattern.permute.xlu1 %v876_v8  ;;  %870 = vset.pattern.permute.xlu0 %v872_v1  ;;  %v148_v8 = vrot.slane %v943_v19, %v953_v24 }
  0x1b   :  { %616 = vperm.xlu1 %865, %v22_v6  }
  0x1c   :  { %v188_v34 = vrot.slane %v148_v8, %v953_v24 }
  0x1f   :  { %866 = vset.pattern.permute.xlu1 %v877_v9  ;;  %v152_v9 = vrot.slane %v943_v19, %v955_v25 }
  0x20   :  { %668 = vperm.xlu1 %866, %v22_v6  }
  0x21   :  { %v192_v35 = vrot.slane %v152_v9, %v953_v24 }
  0x24   :  { %868 = vset.pattern.permute.xlu1 %v878_v10  ;;  %v348_v10 = vrot.slane %v308_v58, %v949_v22 }
  0x25   :  { %772 = vperm.xlu1 %868, %v22_v6   ;;  %v140_v6 = vrot.slane %v938_v18, %v953_v24  ;;  %v372_v18 = vrot.slane %v332_v0, %v949_v22 }
  0x27   :  { %v180_v32 = vrot.slane %v140_v6, %v953_v24 }
  0x29   :  { %869 = vset.pattern.permute.xlu1 %v872_v1  ;;  %v336_v1 = vrot.slane %v943_v19, %v951_v23  ;;  %v164_v19 = vrot.slane %v124_v2, %v953_v24 }
  0x2a   :  { %825 = vperm.xlu1 %869, %v23_v11   ;;  %v352_v11 = vrot.slane %v312_v59, %v949_v22 }
  0x2b   :  { %v376_v26 = vrot.slane %v336_v1, %v949_v22 }
  0x81   :  { %v211_v27 = vpop.permute.xlu1 %210  ;;  %v31_v28 = vpop.permute.xlu0 %30 }
  0x82   :  { %v285_v36 = vmul.f32 %v256_v42, %v211_v27  ;;  %v286_v37 = vmul.f32 %v260_v43, %v211_v27  ;;  %v287_v38 = vmul.f32 %v264_v44, %v211_v27  ;;  %v288_v39 = vmul.f32 %v268_v45, %v211_v27 }
  0x83   :  { %v289_v40 = vmul.f32 %v272_v46, %v211_v27  ;;  %v290_v41 = vmul.f32 %v276_v47, %v211_v27  ;;  %v291_v58 = vmul.f32 %v280_v48, %v211_v27  ;;  %v292_v59 = vmul.f32 %v284_v49, %v211_v27 }
  0x84   :  { %v109_v60 = vmul.f32 %v80_v50, %v31_v28  ;;  %v110_v61 = vmul.f32 %v84_v51, %v31_v28  ;;  %v111_v62 = vmul.f32 %v88_v52, %v31_v28  ;;  %v112_v63 = vmul.f32 %v92_v53, %v31_v28 }
  0x85   :  { %v113_v0 = vmul.f32 %v96_v54, %v31_v28  ;;  %v114_v1 = vmul.f32 %v100_v55, %v31_v28  ;;  %v115_v2 = vmul.f32 %v104_v56, %v31_v28  ;;  %v116_v3 = vmul.f32 %v108_v57, %v31_v28 }
  0x86   :  { %v303_v4 = vpop.permute.xlu1 %302  ;;  %v119_v5 = vpop.permute.xlu0 %118 }
  0x87   :  { %v377_v6 = vmul.f32 %v348_v10, %v303_v4  ;;  %v378_v7 = vmul.f32 %v352_v11, %v303_v4  ;;  %v379_v42 = vmul.f32 %v356_v12, %v303_v4  ;;  %v380_v43 = vmul.f32 %v360_v13, %v303_v4 }
  0x88   :  { %v381_v44 = vmul.f32 %v364_v16, %v303_v4  ;;  %v382_v45 = vmul.f32 %v368_v17, %v303_v4  ;;  %v383_v46 = vmul.f32 %v372_v18, %v303_v4  ;;  %v384_v47 = vmul.f32 %v376_v26, %v303_v4 }
  0x89   :  { %v193_v48 = vmul.f32 %v164_v19, %v119_v5  ;;  %v194_v49 = vmul.f32 %v168_v29, %v119_v5  ;;  %v195_v50 = vmul.f32 %v172_v30, %v119_v5  ;;  %v196_v51 = vmul.f32 %v176_v31, %v119_v5 }
  0x8a   :  { %v197_v52 = vmul.f32 %v180_v32, %v119_v5  ;;  %v198_v53 = vmul.f32 %v184_v33, %v119_v5  ;;  %v199_v54 = vmul.f32 %v188_v34, %v119_v5  ;;  %v200_v55 = vmul.f32 %v192_v35, %v119_v5 }
  0x8b   :  { %v201_v56 = vadd.f32 %v193_v48, %v109_v60  ;;  %v202_v57 = vadd.f32 %v194_v49, %v110_v61  ;;  %v203_v8 = vadd.f32 %v195_v50, %v111_v62  ;;  %v204_v9 = vadd.f32 %v196_v51, %v112_v63  ;;  %v396_v34 = vpop.permute.xlu1 %395 }
  0x8c   :  { %v205_v10 = vadd.f32 %v197_v52, %v113_v0  ;;  %v206_v11 = vadd.f32 %v198_v53, %v114_v1  ;;  %v207_v12 = vadd.f32 %v199_v54, %v115_v2  ;;  %v208_v13 = vadd.f32 %v200_v55, %v116_v3 }
  0x8d   :  { %v293_v16 = vadd.f32 %v285_v36, %v201_v56  ;;  %v294_v17 = vadd.f32 %v286_v37, %v202_v57  ;;  %v295_v18 = vadd.f32 %v287_v38, %v203_v8  ;;  %v296_v26 = vadd.f32 %v288_v39, %v204_v9 }
  0x8e   :  { %v297_v27 = vadd.f32 %v289_v40, %v205_v10  ;;  %v298_v28 = vadd.f32 %v290_v41, %v206_v11  ;;  %v299_v19 = vadd.f32 %v291_v58, %v207_v12  ;;  %v300_v29 = vadd.f32 %v292_v59, %v208_v13 }
  0x8f   :  { %v385_v30 = vadd.f32 %v377_v6, %v293_v16  ;;  %v386_v31 = vadd.f32 %v378_v7, %v294_v17  ;;  %v387_v32 = vadd.f32 %v379_v42, %v295_v18  ;;  %v388_v33 = vadd.f32 %v380_v43, %v296_v26 }
  0x90   :  { %v389_v35 = vadd.f32 %v381_v44, %v297_v27  ;;  %v390_v60 = vadd.f32 %v382_v45, %v298_v28  ;;  %v391_v61 = vadd.f32 %v383_v46, %v299_v19  ;;  %v392_v62 = vadd.f32 %v384_v47, %v300_v29  ;;  %v417_v45 = vpop.permute.xlu0 %416  ;;  %v461_v11 = vpop.permute.xlu1 %460 }
  0x91   :  { %v398_v63 = vadd.f32 %v396_v34, %v385_v30  ;;  %v399_v0 = vadd.f32 %v396_v34, %v386_v31  ;;  %v400_v1 = vadd.f32 %v396_v34, %v387_v32  ;;  %v401_v36 = vadd.f32 %v396_v34, %v388_v33 }
  0x92   :  { %v402_v37 = vadd.f32 %v396_v34, %v389_v35  ;;  %v403_v38 = vadd.f32 %v396_v34, %v390_v60  ;;  %v404_v39 = vadd.f32 %v396_v34, %v391_v61  ;;  %v405_v40 = vadd.f32 %v396_v34, %v392_v62 }
  0x93   :  { %v1053_v41 = vmax.f32 %v398_v63, 0.0  ;;  %v1055_v58 = vmax.f32 %v399_v0, 0.0  ;;  %v1057_v59 = vmax.f32 %v400_v1, 0.0  ;;  %v1059_v2 = vmax.f32 %v401_v36, 0.0 }
  0x94   :  { %v1061_v3 = vmax.f32 %v402_v37, 0.0  ;;  %v1063_v4 = vmax.f32 %v403_v38, 0.0  ;;  %v1065_v5 = vmax.f32 %v404_v39, 0.0  ;;  %v1067_v6 = vmax.f32 %v405_v40, 0.0  ;;  %v565_v37 = vpop.permute.xlu0 %564 }
  0x95   :  { %v422_v7 = vrot.slane %v1053_v41, %v945_v20  ;;  %v426_v42 = vrot.slane %v1055_v58, %v945_v20  ;;  %v430_v43 = vrot.slane %v1057_v59, %v945_v20  ;;  %v434_v44 = vrot.slane %v1059_v2, %v945_v20 }
  0x96   :  { %v438_v46 = vrot.slane %v1061_v3, %v945_v20  ;;  %v442_v47 = vrot.slane %v1063_v4, %v945_v20  ;;  %v446_v48 = vrot.slane %v1065_v5, %v945_v20  ;;  %v450_v49 = vrot.slane %v1067_v6, %v945_v20 }
  0x97   :  { %v451_v50 = vmul.f32 %v422_v7, %v417_v45  ;;  %v452_v51 = vmul.f32 %v426_v42, %v417_v45  ;;  %v453_v52 = vmul.f32 %v430_v43, %v417_v45  ;;  %v454_v53 = vmul.f32 %v434_v44, %v417_v45 }
  0x98   :  { %v455_v54 = vmul.f32 %v438_v46, %v417_v45  ;;  %v456_v55 = vmul.f32 %v442_v47, %v417_v45  ;;  %v457_v56 = vmul.f32 %v446_v48, %v417_v45  ;;  %v458_v57 = vmul.f32 %v450_v49, %v417_v45 }
  0x99   :  { %v466_v8 = vrot.slane %v1053_v41, %v953_v24  ;;  %v470_v9 = vrot.slane %v1055_v58, %v953_v24  ;;  %v474_v10 = vrot.slane %v1057_v59, %v953_v24  ;;  %v478_v20 = vrot.slane %v1059_v2, %v953_v24 }
  0x9a   :  { %v482_v12 = vrot.slane %v1061_v3, %v953_v24  ;;  %v486_v13 = vrot.slane %v1063_v4, %v953_v24  ;;  %v490_v16 = vrot.slane %v1065_v5, %v953_v24  ;;  %v494_v17 = vrot.slane %v1067_v6, %v953_v24 }
  0x9b   :  { %v495_v18 = vmul.f32 %v466_v8, %v461_v11  ;;  %v496_v26 = vmul.f32 %v470_v9, %v461_v11  ;;  %v497_v27 = vmul.f32 %v474_v10, %v461_v11  ;;  %v498_v28 = vmul.f32 %v478_v20, %v461_v11 }
  0x9c   :  { %v499_v19 = vmul.f32 %v482_v12, %v461_v11  ;;  %v500_v29 = vmul.f32 %v486_v13, %v461_v11  ;;  %v501_v30 = vmul.f32 %v490_v16, %v461_v11  ;;  %v502_v31 = vmul.f32 %v494_v17, %v461_v11 }
  0x9d   :  { %v503_v32 = vadd.f32 %v495_v18, %v451_v50  ;;  %v504_v33 = vadd.f32 %v496_v26, %v452_v51  ;;  %v505_v34 = vadd.f32 %v497_v27, %v453_v52  ;;  %v506_v35 = vadd.f32 %v498_v28, %v454_v53  ;;  %v513_v50 = vpop.permute.xlu1 %512 }
  0x9e   :  { %v507_v60 = vadd.f32 %v499_v19, %v455_v54  ;;  %v508_v61 = vadd.f32 %v500_v29, %v456_v55  ;;  %v509_v62 = vadd.f32 %v501_v30, %v457_v56  ;;  %v510_v63 = vadd.f32 %v502_v31, %v458_v57  ;;  %v721_v31 = vpop.permute.xlu0 %720 }
  0x9f   :  { %v570_v0 = vrot.slane %v1053_v41, %v949_v22  ;;  %v574_v24 = vrot.slane %v1055_v58, %v949_v22  ;;  %v578_v1 = vrot.slane %v1057_v59, %v949_v22  ;;  %v582_v36 = vrot.slane %v1059_v2, %v949_v22 }
  0xa0   :  { %v586_v38 = vrot.slane %v1061_v3, %v949_v22  ;;  %v590_v39 = vrot.slane %v1063_v4, %v949_v22  ;;  %v594_v40 = vrot.slane %v1065_v5, %v949_v22  ;;  %v598_v7 = vrot.slane %v1067_v6, %v949_v22 }
  0xa1   :  { %v599_v42 = vmul.f32 %v570_v0, %v565_v37  ;;  %v600_v43 = vmul.f32 %v574_v24, %v565_v37  ;;  %v601_v44 = vmul.f32 %v578_v1, %v565_v37  ;;  %v602_v45 = vmul.f32 %v582_v36, %v565_v37 }
  0xa2   :  { %v603_v46 = vmul.f32 %v586_v38, %v565_v37  ;;  %v604_v47 = vmul.f32 %v590_v39, %v565_v37  ;;  %v605_v48 = vmul.f32 %v594_v40, %v565_v37  ;;  %v606_v49 = vmul.f32 %v598_v7, %v565_v37 }
  0xa3   :  { %v518_v51 = vrot.slane %v1053_v41, %v921_v14  ;;  %v522_v52 = vrot.slane %v1055_v58, %v921_v14  ;;  %v526_v53 = vrot.slane %v1057_v59, %v921_v14  ;;  %v530_v22 = vrot.slane %v1059_v2, %v921_v14 }
  0xa4   :  { %v534_v54 = vrot.slane %v1061_v3, %v921_v14  ;;  %v538_v55 = vrot.slane %v1063_v4, %v921_v14  ;;  %v542_v56 = vrot.slane %v1065_v5, %v921_v14  ;;  %v546_v57 = vrot.slane %v1067_v6, %v921_v14 }
  0xa5   :  { %v547_v8 = vmul.f32 %v518_v51, %v513_v50  ;;  %v548_v9 = vmul.f32 %v522_v52, %v513_v50  ;;  %v549_v10 = vmul.f32 %v526_v53, %v513_v50  ;;  %v550_v20 = vmul.f32 %v530_v22, %v513_v50  ;;  %v617_v51 = vpop.permute.xlu1 %616 }
  0xa6   :  { %v551_v11 = vmul.f32 %v534_v54, %v513_v50  ;;  %v552_v12 = vmul.f32 %v538_v55, %v513_v50  ;;  %v553_v13 = vmul.f32 %v542_v56, %v513_v50  ;;  %v554_v16 = vmul.f32 %v546_v57, %v513_v50 }
  0xa7   :  { %v555_v17 = vadd.f32 %v547_v8, %v503_v32  ;;  %v556_v18 = vadd.f32 %v548_v9, %v504_v33  ;;  %v557_v26 = vadd.f32 %v549_v10, %v505_v34  ;;  %v558_v27 = vadd.f32 %v550_v20, %v506_v35 }
  0xa8   :  { %v559_v28 = vadd.f32 %v551_v11, %v507_v60  ;;  %v560_v19 = vadd.f32 %v552_v12, %v508_v61  ;;  %v561_v29 = vadd.f32 %v553_v13, %v509_v62  ;;  %v562_v30 = vadd.f32 %v554_v16, %v510_v63 }
  0xa9   :  { %v726_v14 = vrot.slane %v1053_v41, %v923_v15  ;;  %v730_v0 = vrot.slane %v1055_v58, %v923_v15  ;;  %v734_v24 = vrot.slane %v1057_v59, %v923_v15  ;;  %v738_v32 = vrot.slane %v1059_v2, %v923_v15 }
  0xaa   :  { %v742_v33 = vrot.slane %v1061_v3, %v923_v15  ;;  %v746_v34 = vrot.slane %v1063_v4, %v923_v15  ;;  %v750_v35 = vrot.slane %v1065_v5, %v923_v15  ;;  %v754_v60 = vrot.slane %v1067_v6, %v923_v15 }
  0xab   :  { %v1149_v61 = vmul.f32 %v726_v14, %v721_v31  ;;  %v1151_v62 = vmul.f32 %v730_v0, %v721_v31  ;;  %v1153_v63 = vmul.f32 %v734_v24, %v721_v31  ;;  %v1155_v1 = vmul.f32 %v738_v32, %v721_v31 }
  0xac   :  { %v1157_v36 = vmul.f32 %v742_v33, %v721_v31  ;;  %v1159_v37 = vmul.f32 %v746_v34, %v721_v31  ;;  %v1161_v38 = vmul.f32 %v750_v35, %v721_v31  ;;  %v1163_v39 = vmul.f32 %v754_v60, %v721_v31 }
  0xad   :  { %v607_v40 = vadd.f32 %v599_v42, %v555_v17  ;;  %v608_v7 = vadd.f32 %v600_v43, %v556_v18  ;;  %v609_v50 = vadd.f32 %v601_v44, %v557_v26  ;;  %v610_v15 = vadd.f32 %v602_v45, %v558_v27 }
  0xae   :  { %v611_v52 = vadd.f32 %v603_v46, %v559_v28  ;;  %v612_v53 = vadd.f32 %v604_v47, %v560_v19  ;;  %v613_v22 = vadd.f32 %v605_v48, %v561_v29  ;;  %v614_v54 = vadd.f32 %v606_v49, %v562_v30  ;;  %v669_v19 = vpop.permute.xlu1 %668 }
  0xaf   :  { %v622_v55 = vrot.slane %v1053_v41, %v947_v21  ;;  %v626_v56 = vrot.slane %v1055_v58, %v947_v21  ;;  %v630_v57 = vrot.slane %v1057_v59, %v947_v21  ;;  %v634_v42 = vrot.slane %v1059_v2, %v947_v21 }
  0xb0   :  { %v638_v43 = vrot.slane %v1061_v3, %v947_v21  ;;  %v642_v44 = vrot.slane %v1063_v4, %v947_v21  ;;  %v646_v45 = vrot.slane %v1065_v5, %v947_v21  ;;  %v650_v46 = vrot.slane %v1067_v6, %v947_v21 }
  0xb1   :  { %v651_v47 = vmul.f32 %v622_v55, %v617_v51  ;;  %v652_v48 = vmul.f32 %v626_v56, %v617_v51  ;;  %v653_v49 = vmul.f32 %v630_v57, %v617_v51  ;;  %v654_v8 = vmul.f32 %v634_v42, %v617_v51 }
  0xb2   :  { %v655_v9 = vmul.f32 %v638_v43, %v617_v51  ;;  %v656_v10 = vmul.f32 %v642_v44, %v617_v51  ;;  %v657_v20 = vmul.f32 %v646_v45, %v617_v51  ;;  %v658_v11 = vmul.f32 %v650_v46, %v617_v51 }
  0xb3   :  { %v659_v12 = vadd.f32 %v651_v47, %v607_v40  ;;  %v660_v13 = vadd.f32 %v652_v48, %v608_v7  ;;  %v661_v16 = vadd.f32 %v653_v49, %v609_v50  ;;  %v662_v17 = vadd.f32 %v654_v8, %v610_v15 }
  0xb4   :  { %v663_v18 = vadd.f32 %v655_v9, %v611_v52  ;;  %v664_v26 = vadd.f32 %v656_v10, %v612_v53  ;;  %v665_v27 = vadd.f32 %v657_v20, %v613_v22  ;;  %v666_v28 = vadd.f32 %v658_v11, %v614_v54  ;;  %v773_v54 = vpop.permute.xlu1 %772 }
  0xb5   :  { %v674_v21 = vrot.slane %v1053_v41, %v955_v25  ;;  %v678_v29 = vrot.slane %v1055_v58, %v955_v25  ;;  %v682_v30 = vrot.slane %v1057_v59, %v955_v25  ;;  %v686_v31 = vrot.slane %v1059_v2, %v955_v25 }
  0xb6   :  { %v690_v14 = vrot.slane %v1061_v3, %v955_v25  ;;  %v694_v0 = vrot.slane %v1063_v4, %v955_v25  ;;  %v698_v24 = vrot.slane %v1065_v5, %v955_v25  ;;  %v702_v32 = vrot.slane %v1067_v6, %v955_v25 }
  0xb7   :  { %v703_v33 = vmul.f32 %v674_v21, %v669_v19  ;;  %v704_v34 = vmul.f32 %v678_v29, %v669_v19  ;;  %v705_v35 = vmul.f32 %v682_v30, %v669_v19  ;;  %v706_v60 = vmul.f32 %v686_v31, %v669_v19 }
  0xb8   :  { %v707_v40 = vmul.f32 %v690_v14, %v669_v19  ;;  %v708_v7 = vmul.f32 %v694_v0, %v669_v19  ;;  %v709_v50 = vmul.f32 %v698_v24, %v669_v19  ;;  %v710_v15 = vmul.f32 %v702_v32, %v669_v19 }
  0xb9   :  { %v711_v51 = vadd.f32 %v703_v33, %v659_v12  ;;  %v712_v52 = vadd.f32 %v704_v34, %v660_v13  ;;  %v713_v53 = vadd.f32 %v705_v35, %v661_v16  ;;  %v714_v22 = vadd.f32 %v706_v60, %v662_v17 }
  0xba   :  { %v715_v55 = vadd.f32 %v707_v40, %v663_v18  ;;  %v716_v56 = vadd.f32 %v708_v7, %v664_v26  ;;  %v717_v57 = vadd.f32 %v709_v50, %v665_v27  ;;  %v718_v42 = vadd.f32 %v710_v15, %v666_v28 }
  0xbb   :  { %v763_v43 = vadd.f32 %v1149_v61, %v711_v51  ;;  %v764_v25 = vadd.f32 %v1151_v62, %v712_v52  ;;  %v765_v44 = vadd.f32 %v1153_v63, %v713_v53  ;;  %v766_v45 = vadd.f32 %v1155_v1, %v714_v22 }
  0xbc   :  { %v767_v46 = vadd.f32 %v1157_v36, %v715_v55  ;;  %v768_v47 = vadd.f32 %v1159_v37, %v716_v56  ;;  %v769_v48 = vadd.f32 %v1161_v38, %v717_v57  ;;  %v770_v49 = vadd.f32 %v1163_v39, %v718_v42 }
  0xbd   :  { %v778_v8 = vrot.slane %v1053_v41, %v951_v23  ;;  %v782_v61 = vrot.slane %v1055_v58, %v951_v23  ;;  %v786_v62 = vrot.slane %v1057_v59, %v951_v23  ;;  %v790_v63 = vrot.slane %v1059_v2, %v951_v23  ;;  %v826_v59 = vpop.permute.xlu1 %825 }
  0xbe   :  { %v794_v1 = vrot.slane %v1061_v3, %v951_v23  ;;  %v798_v36 = vrot.slane %v1063_v4, %v951_v23  ;;  %v802_v37 = vrot.slane %v1065_v5, %v951_v23  ;;  %v806_v41 = vrot.slane %v1067_v6, %v951_v23 }
  0xbf   :  { %v807_v38 = vmul.f32 %v778_v8, %v773_v54  ;;  %v808_v58 = vmul.f32 %v782_v61, %v773_v54  ;;  %v809_v39 = vmul.f32 %v786_v62, %v773_v54  ;;  %v810_v9 = vmul.f32 %v790_v63, %v773_v54 }
  0xc0   :  { %v811_v10 = vmul.f32 %v794_v1, %v773_v54  ;;  %v812_v20 = vmul.f32 %v798_v36, %v773_v54  ;;  %v813_v2 = vmul.f32 %v802_v37, %v773_v54  ;;  %v814_v11 = vmul.f32 %v806_v41, %v773_v54 }
  0xc1   :  { %v815_v12 = vadd.f32 %v807_v38, %v763_v43  ;;  %v816_v3 = vadd.f32 %v808_v58, %v764_v25  ;;  %v817_v13 = vadd.f32 %v809_v39, %v765_v44  ;;  %v818_v16 = vadd.f32 %v810_v9, %v766_v45 }
  0xc2   :  { %v819_v4 = vadd.f32 %v811_v10, %v767_v46  ;;  %v820_v17 = vadd.f32 %v812_v20, %v768_v47  ;;  %v821_v18 = vadd.f32 %v813_v2, %v769_v48  ;;  %v822_v5 = vadd.f32 %v814_v11, %v770_v49 }
  0xc3   :  { %v828_v26 = vadd.f32 %v826_v59, %v815_v12  ;;  %v829_v27 = vadd.f32 %v826_v59, %v816_v3  ;;  %v830_v23 = vadd.f32 %v826_v59, %v817_v13  ;;  %v831_v6 = vadd.f32 %v826_v59, %v818_v16 }
  0xc4   :  { %v832_v28 = vadd.f32 %v826_v59, %v819_v4  ;;  %v833_v19 = vadd.f32 %v826_v59, %v820_v17  ;;  %v834_v21 = vadd.f32 %v826_v59, %v821_v18  ;;  %v835_v29 = vadd.f32 %v826_v59, %v822_v5 }
  0xc5   :  { %836 = vst [vmem:[%s1250_s5] sm:$0xff] %v828_v26  ;;  %837 = vst [vmem:[%s1250_s5 + $0x8] sm:$0xff] %v829_v27 }
  0xc6   :  { %838 = vst [vmem:[%s1250_s5 + $0x10] sm:$0xff] %v830_v23  ;;  %839 = vst [vmem:[%s1250_s5 + $0x18] sm:$0xff] %v831_v6 }
  0xc7   :  { %840 = vst [vmem:[%s1250_s5 + $0x20] sm:$0xff] %v832_v28  ;;  %841 = vst [vmem:[%s1250_s5 + $0x28] sm:$0xff] %v833_v19 }
  0xc8   :  { %842 = vst [vmem:[%s1250_s5 + $0x30] sm:$0xff] %v834_v21  ;;  %843 = vst [vmem:[%s1250_s5 + $0x38] sm:$0xff] %v835_v29 }

</bundles_post_ra>
